<compile_context>
chip_gen: v7x
topology: tpu7x:2x2x1
jax: 0.10.0
libtpu: 0.0.40
codegen_flags: <defaults>
</compile_context>

<pallas_src>
import functools

import jax
import jax.numpy as jnp
from jax import lax
from jax.experimental import pallas as pl
from jax.experimental.pallas import tpu as pltpu

BN_EPS = 1e-5

# ----- hardware-aware tiling / VMEM budget ----------------------------------
try:
    _VMEM_CAP = int(pltpu.get_tpu_info().vmem_capacity_bytes)
except Exception:
    _VMEM_CAP = 128 * 1024 * 1024
# v5e/v6e (128 MiB VMEM) -> 512-wide L tiles; v7x (64 MiB) -> 256-wide L tiles.
MAX_TILE_LOUT = 512 if _VMEM_CAP >= 96 * 1024 * 1024 else 256
VMEM_LIMIT_BYTES = int(min(48 * 1024 * 1024, (_VMEM_CAP * 3) // 4))


def _pick_tile(lout):
    """Largest multiple-of-128 divisor of lout that fits the budget, else lout."""
    if lout <= MAX_TILE_LOUT:
        return lout
    t = (MAX_TILE_LOUT // 128) * 128
    while t >= 128:
        if lout % t == 0:
            return t
        t -= 128
    # TODO(synk): ragged L tiling (masked last tile); fall back to one big tile.
    return lout


# ----------------------------------------------------------------------------
# Kernel builder (static config closed over)
# ----------------------------------------------------------------------------
def _build_kernel(*, stride, has_expand, use_res, L, tile_out, num_tiles):
    def kernel(*refs):
        o_ref = refs[-1]
        ins = list(refs[:-1])
        if stride == 1:
            x_ref = ins.pop(0)                      # (inp, L + 2)  zero-padded halo
        else:
            xe_ref = ins.pop(0)                     # (inp, Lout)      x[0::2]
            xo_ref = ins.pop(0)                     # (inp, Lout + 1)  [0, x[1::2]]
        if has_expand:
            w1_ref = ins.pop(0)                     # (hidden, inp)   BN1-folded
            b1_ref = ins.pop(0)                     # (hidden, 1)

            def expand(xm):
                h = jnp.dot(w1_ref[...], xm.astype(w1_ref.dtype),
                            preferred_element_type=jnp.float32)
                return jnp.clip(h + b1_ref[...], 0.0, 6.0)

        wd_ref, b2_ref, w3_ref, b3_ref = ins        # (hidden,3),(hidden,1),(oup,hidden),(oup,1)

        j = pl.program_id(1)
        T = tile_out
        wd = wd_ref[...]

        if stride == 1:
            # window of L positions [j*T - 1, j*T + T + 1) in original coords
            if num_tiles == 1:
                xw = x_ref[...]                                     # (inp, T + 2)
            else:
                start = pl.multiple_of(j * T, 128)
                xw = x_ref[:, pl.ds(start, T + 2)]
            if has_expand:
                h = expand(xw)                                      # (hidden, T + 2)
                # depthwise conv zero-pads h (not x): zero the two pad columns.
                pos = j * T + lax.broadcasted_iota(jnp.int32, h.shape, 1)
                h = jnp.where((pos >= 1) & (pos <= L), h, 0.0)
            else:
                h = xw.astype(jnp.float32)                          # pad cols already 0
            dw = (h[:, 0:T]     * wd[:, 0:1] +
                  h[:, 1:T + 1] * wd[:, 1:2] +
                  h[:, 2:T + 2] * wd[:, 2:3])
        else:
            # output lo needs h[2lo-1], h[2lo], h[2lo+1]  (even / odd phases)
            if num_tiles == 1:
                xe = xe_ref[...]                                    # (inp, T)
                xo = xo_ref[...]                                    # (inp, T + 1)
            else:
                start = pl.multiple_of(j * T, 128)
                xe = xe_ref[:, pl.ds(start, T)]
                xo = xo_ref[:, pl.ds(start, T + 1)]
            if has_expand:
                he = expand(xe)                                     # (hidden, T)
                ho = expand(xo)                                     # (hidden, T + 1)
                pos = j * T + lax.broadcasted_iota(jnp.int32, ho.shape, 1)
                ho = jnp.where(pos >= 1, ho, 0.0)                   # left zero-pad col
            else:
                he = xe.astype(jnp.float32)
                ho = xo.astype(jnp.float32)
            dw = (ho[:, 0:T]     * wd[:, 0:1] +
                  he              * wd[:, 1:2] +
                  ho[:, 1:T + 1] * wd[:, 2:3])

        dw = jnp.clip(dw + b2_ref[...], 0.0, 6.0)

        out = jnp.dot(w3_ref[...], dw.astype(w3_ref.dtype),
                      preferred_element_type=jnp.float32)           # (oup, T)
        out = out + b3_ref[...]
        if use_res:                                 # stride==1 and inp==oup
            out = out + xw[:, 1:T + 1]
        o_ref[...] = out.astype(o_ref.dtype)

    return kernel


# ----------------------------------------------------------------------------
# Wrapper: BN folding, layout prep, pallas_call
# ----------------------------------------------------------------------------
@functools.partial(jax.jit, static_argnames=("stride", "expand_ratio", "matmul_dtype"))
def inverted_residual_forward(x, params, *, stride, expand_ratio,
                              matmul_dtype=jnp.float32):
    N, inp, L = x.shape
    assert stride in (1, 2)
    if stride == 2:
        assert L % 2 == 0, "stride-2 path assumes even sequence length"
    has_expand = expand_ratio != 1
    hidden = params['wd'].shape[0]
    oup = params['w3'].shape[0]
    use_res = (stride == 1) and (inp == oup)

    Lout = L // stride
    tile_out = _pick_tile(Lout)
    num_tiles = Lout // tile_out

    x = x.astype(jnp.float32)
    md = matmul_dtype

    def fold_bn(bn):
        gamma, beta, mean, var = bn
        s = gamma / jnp.sqrt(var + BN_EPS)
        return s, beta - mean * s

    inputs, in_specs = [], []

    # --- activation inputs (full L resident per batch row; tiled in-kernel) ---
    if stride == 1:
        x_pad = jnp.pad(x, ((0, 0), (0, 0), (1, 1)))                 # depthwise halo
        inputs.append(x_pad)
        in_specs.append(pl.BlockSpec((None, inp, L + 2), lambda n, j: (n, 0, 0)))
    else:
        x_even = x[:, :, 0::2]                                        # (N, inp, Lout)
        x_odd = jnp.pad(x[:, :, 1::2], ((0, 0), (0, 0), (1, 0)))      # (N, inp, Lout+1)
        inputs += [x_even, x_odd]
        in_specs += [pl.BlockSpec((None, inp, Lout), lambda n, j: (n, 0, 0)),
                     pl.BlockSpec((None, inp, Lout + 1), lambda n, j: (n, 0, 0))]

    # --- weights with BN scales folded in (one-time constant folds) -----------
    if has_expand:
        s1, sh1 = fold_bn(params['bn1'])
        w1f = (params['w1'][:, :, 0] * s1[:, None]).astype(md)        # (hidden, inp)
        b1 = sh1[:, None].astype(jnp.float32)                         # (hidden, 1)
        inputs += [w1f, b1]
        in_specs += [pl.BlockSpec((hidden, inp), lambda n, j: (0, 0)),
                     pl.BlockSpec((hidden, 1), lambda n, j: (0, 0))]

    s2, sh2 = fold_bn(params['bn2'])
    wdf = (params['wd'][:, 0, :] * s2[:, None]).astype(jnp.float32)   # (hidden, 3)
    b2 = sh2[:, None].astype(jnp.float32)                             # (hidden, 1)
    s3, sh3 = fold_bn(params['bn3'])
    w3f = (params['w3'][:, :, 0] * s3[:, None]).astype(md)            # (oup, hidden)
    b3 = sh3[:, None].astype(jnp.float32)                             # (oup, 1)
    inputs += [wdf, b2, w3f, b3]
    in_specs += [pl.BlockSpec((hidden, 3), lambda n, j: (0, 0)),
                 pl.BlockSpec((hidden, 1), lambda n, j: (0, 0)),
                 pl.BlockSpec((oup, hidden), lambda n, j: (0, 0)),
                 pl.BlockSpec((oup, 1), lambda n, j: (0, 0))]

    kernel = _build_kernel(stride=stride, has_expand=has_expand, use_res=use_res,
                           L=L, tile_out=tile_out, num_tiles=num_tiles)

    return pl.pallas_call(
        kernel,
        out_shape=jax.ShapeDtypeStruct((N, oup, Lout), jnp.float32),
        grid=(N, num_tiles),
        in_specs=in_specs,
        out_specs=pl.BlockSpec((None, oup, tile_out), lambda n, j: (n, 0, j)),
        compiler_params=pltpu.CompilerParams(
            dimension_semantics=("parallel", "parallel"),
            vmem_limit_bytes=VMEM_LIMIT_BYTES),
    )(*inputs)


# ----------------------------------------------------------------------------
# Deterministic parameter init (shapes match the PyTorch module __init__)
# ----------------------------------------------------------------------------
def _bn_params(key, c):
    k1, k2, k3, k4 = jax.random.split(key, 4)
    gamma = jax.random.uniform(k1, (c,), jnp.float32, 0.5, 1.5)
    beta = jax.random.normal(k2, (c,), jnp.float32) * 0.1
    mean = jax.random.normal(k3, (c,), jnp.float32) * 0.1
    var = jax.random.uniform(k4, (c,), jnp.float32, 0.5, 1.5)
    return gamma, beta, mean, var


def init_params(key, inp, oup, expand_ratio):
    hidden = int(round(inp * expand_ratio))
    ks = jax.random.split(key, 6)
    params = {}
    if expand_ratio != 1:
        params['w1'] = jax.random.normal(ks[0], (hidden, inp, 1), jnp.float32) * 0.1
        params['bn1'] = _bn_params(ks[1], hidden)
    params['wd'] = jax.random.normal(ks[2], (hidden, 1, 3), jnp.float32) * 0.1
    params['bn2'] = _bn_params(ks[3], hidden)
    params['w3'] = jax.random.normal(ks[4], (oup, hidden, 1), jnp.float32) * 0.1
    params['bn3'] = _bn_params(ks[5], oup)
    return params


# ----------------------------------------------------------------------------
# Pure-JAX reference (lax.conv) for correctness checking
# ----------------------------------------------------------------------------
def _conv1d(x, w, stride, padding, groups):
    return lax.conv_general_dilated(
        x, w, window_strides=(stride,), padding=[(padding, padding)],
        dimension_numbers=('NCH', 'OIH', 'NCH'), feature_group_count=groups)


def _bn(x, gamma, beta, mean, var):
    g = gamma.reshape(1, -1, 1); b = beta.reshape(1, -1, 1)
    m = mean.reshape(1, -1, 1); v = var.reshape(1, -1, 1)
    return (x - m) / jnp.sqrt(v + BN_EPS) * g + b


def reference_forward(x, params, *, stride, expand_ratio):
    N, inp, L = x.shape
    hidden = int(round(inp * expand_ratio))
    oup = params['w3'].shape[0]
    h = x
    if expand_ratio != 1:
        h = _conv1d(h, params['w1'], 1, 0, 1)
        h = jnp.clip(_bn(h, *params['bn1']), 0.0, 6.0)
    h = _conv1d(h, params['wd'], stride, 1, hidden)
    h = jnp.clip(_bn(h, *params['bn2']), 0.0, 6.0)
    h = _conv1d(h, params['w3'], 1, 0, 1)
    h = _bn(h, *params['bn3'])
    if stride == 1 and inp == oup:
        h = x + h
    return h


# ----------------------------------------------------------------------------
if __name__ == "__main__":
    def check(cfg_idx, N, inp, oup, L, stride, er, *, md=jnp.float32, tol=1e-3):
        key = jax.random.fold_in(jax.random.PRNGKey(0), cfg_idx)
        kx, kp = jax.random.split(key)
        x = jax.random.normal(kx, (N, inp, L), jnp.float32)
        params = init_params(kp, inp, oup, er)
        out = jax.block_until_ready(
            inverted_residual_forward(x, params, stride=stride, expand_ratio=er,
                                      matmul_dtype=md))
        ref = reference_forward(x, params, stride=stride, expand_ratio=er)
        assert out.shape == ref.shape, (cfg_idx, out.shape, ref.shape)
        err = float(jnp.max(jnp.abs(out - ref)))
        assert jnp.allclose(out, ref, atol=tol, rtol=tol), (cfg_idx, err)

    # 1) residual path: stride=1, inp==oup, expand_ratio=4 (single L tile)
    check(1, 2, 8, 8, 16, 1, 4)
    # 2) downsample path: stride=2, expand_ratio=1, no residual (single L tile)
    check(2, 2, 8, 16, 16, 2, 1)
    # 3) multi-tile grid (exercises the pipelined L tiling), residual path
    check(3, 2, 8, 8, 1024, 1, 4)
    # 4) multi-tile grid, stride=2 with expansion, no residual
    check(4, 2, 8, 16, 2048, 2, 6)
    # 5) bf16 MXU path (f32 accumulation), looser tolerance
    check(5, 2, 8, 8, 256, 1, 4, md=jnp.bfloat16, tol=5e-2)

    print("KERNEL_OK")
</pallas_src>

<mosaic_0001>
module attributes {stable_mosaic.version = 11 : i64} {
  func.func @kernel(%arg0: i32, %arg1: i32, %arg2: memref<1x8x18xf32, #tpu.memory_space<vmem>>, %arg3: memref<32x8xf32, #tpu.memory_space<vmem>>, %arg4: memref<32x1xf32, #tpu.memory_space<vmem>>, %arg5: memref<32x3xf32, #tpu.memory_space<vmem>>, %arg6: memref<32x1xf32, #tpu.memory_space<vmem>>, %arg7: memref<8x32xf32, #tpu.memory_space<vmem>>, %arg8: memref<8x1xf32, #tpu.memory_space<vmem>>, %arg9: memref<1x8x16xf32, #tpu.memory_space<vmem>>) attributes {dimension_semantics = [#tpu.dimension_semantics<parallel>, #tpu.dimension_semantics<parallel>], iteration_bounds = array<i64: 2, 1>, scalar_prefetch = 0 : i64, scratch_operands = 0 : i64, tpu.core_type = #tpu.core_type<tc>, window_params = [{transform_indices = @transform_0, window_bounds = array<i64: 1, 8, 18>}, {pipeline_mode = #tpu.pipeline_mode<synchronous>, transform_indices = @transform_1, window_bounds = array<i64: 32, 8>}, {pipeline_mode = #tpu.pipeline_mode<synchronous>, transform_indices = @transform_2, window_bounds = array<i64: 32, 1>}, {pipeline_mode = #tpu.pipeline_mode<synchronous>, transform_indices = @transform_3, window_bounds = array<i64: 32, 3>}, {pipeline_mode = #tpu.pipeline_mode<synchronous>, transform_indices = @transform_4, window_bounds = array<i64: 32, 1>}, {pipeline_mode = #tpu.pipeline_mode<synchronous>, transform_indices = @transform_5, window_bounds = array<i64: 8, 32>}, {pipeline_mode = #tpu.pipeline_mode<synchronous>, transform_indices = @transform_6, window_bounds = array<i64: 8, 1>}, {transform_indices = @transform_7, window_bounds = array<i64: 1, 8, 16>}]} {
    %c0 = arith.constant 0 : index
    %c0_0 = arith.constant 0 : index
    %0 = vector.load %arg5[%c0, %c0_0] : memref<32x3xf32, #tpu.memory_space<vmem>>, vector<32x3xf32>
    %c0_1 = arith.constant 0 : index
    %c0_2 = arith.constant 0 : index
    %c0_3 = arith.constant 0 : index
    %1 = vector.load %arg2[%c0_1, %c0_2, %c0_3] : memref<1x8x18xf32, #tpu.memory_space<vmem>>, vector<1x8x18xf32>
    %2 = vector.shape_cast %1 : vector<1x8x18xf32> to vector<8x18xf32>
    %c0_4 = arith.constant 0 : index
    %c0_5 = arith.constant 0 : index
    %3 = vector.load %arg3[%c0_4, %c0_5] : memref<32x8xf32, #tpu.memory_space<vmem>>, vector<32x8xf32>
    %cst = arith.constant dense<0.000000e+00> : vector<32x18xf32>
    %4 = tpu.matmul %3, %2, %cst {dimension_numbers = #tpu.dot_dimension_numbers<[1], [0], [0], [1], [0, 0, 1, 1], [], []>} : vector<32x8xf32>, vector<8x18xf32>, vector<32x18xf32> -> vector<32x18xf32>
    %c0_6 = arith.constant 0 : index
    %c0_7 = arith.constant 0 : index
    %5 = vector.load %arg4[%c0_6, %c0_7] : memref<32x1xf32, #tpu.memory_space<vmem>>, vector<32x1xf32>
    %6 = vector.broadcast %5 : vector<32x1xf32> to vector<32x18xf32>
    %7 = arith.addf %4, %6 : vector<32x18xf32>
    %cst_8 = arith.constant 0.000000e+00 : f32
    %cst_9 = arith.constant 6.000000e+00 : f32
    %8 = vector.broadcast %cst_8 : f32 to vector<32x18xf32>
    %9 = arith.maximumf %8, %7 : vector<32x18xf32>
    %10 = vector.broadcast %cst_9 : f32 to vector<32x18xf32>
    %11 = arith.minimumf %10, %9 : vector<32x18xf32>
    %c16_i32 = arith.constant 16 : i32
    %12 = arith.muli %arg1, %c16_i32 : i32
    %13 = tpu.iota {dimensions = array<i32: 1>} : vector<32x18xi32>
    %14 = vector.broadcast %12 : i32 to vector<32x18xi32>
    %15 = arith.addi %14, %13 : vector<32x18xi32>
    %c1_i32 = arith.constant 1 : i32
    %16 = vector.broadcast %c1_i32 : i32 to vector<32x18xi32>
    %17 = arith.cmpi sge, %15, %16 : vector<32x18xi32>
    %c16_i32_10 = arith.constant 16 : i32
    %18 = vector.broadcast %c16_i32_10 : i32 to vector<32x18xi32>
    %19 = arith.cmpi sle, %15, %18 : vector<32x18xi32>
    %20 = arith.andi %17, %19 : vector<32x18xi1>
    %cst_11 = arith.constant 0.000000e+00 : f32
    %21 = vector.broadcast %cst_11 : f32 to vector<32x18xf32>
    %22 = arith.select %20, %11, %21 : vector<32x18xi1>, vector<32x18xf32>
    %23 = vector.extract_strided_slice %22 {offsets = [0, 0], sizes = [32, 16], strides = [1, 1]} : vector<32x18xf32> to vector<32x16xf32>
    %24 = vector.extract_strided_slice %0 {offsets = [0, 0], sizes = [32, 1], strides = [1, 1]} : vector<32x3xf32> to vector<32x1xf32>
    %25 = vector.broadcast %24 : vector<32x1xf32> to vector<32x16xf32>
    %26 = arith.mulf %23, %25 : vector<32x16xf32>
    %27 = vector.extract_strided_slice %22 {offsets = [0, 1], sizes = [32, 16], strides = [1, 1]} : vector<32x18xf32> to vector<32x16xf32>
    %28 = vector.extract_strided_slice %0 {offsets = [0, 1], sizes = [32, 1], strides = [1, 1]} : vector<32x3xf32> to vector<32x1xf32>
    %29 = vector.broadcast %28 : vector<32x1xf32> to vector<32x16xf32>
    %30 = arith.mulf %27, %29 : vector<32x16xf32>
    %31 = arith.addf %26, %30 : vector<32x16xf32>
    %32 = vector.extract_strided_slice %22 {offsets = [0, 2], sizes = [32, 16], strides = [1, 1]} : vector<32x18xf32> to vector<32x16xf32>
    %33 = vector.extract_strided_slice %0 {offsets = [0, 2], sizes = [32, 1], strides = [1, 1]} : vector<32x3xf32> to vector<32x1xf32>
    %34 = vector.broadcast %33 : vector<32x1xf32> to vector<32x16xf32>
    %35 = arith.mulf %32, %34 : vector<32x16xf32>
    %36 = arith.addf %31, %35 : vector<32x16xf32>
    %c0_12 = arith.constant 0 : index
    %c0_13 = arith.constant 0 : index
    %37 = vector.load %arg6[%c0_12, %c0_13] : memref<32x1xf32, #tpu.memory_space<vmem>>, vector<32x1xf32>
    %38 = vector.broadcast %37 : vector<32x1xf32> to vector<32x16xf32>
    %39 = arith.addf %36, %38 : vector<32x16xf32>
    %cst_14 = arith.constant 0.000000e+00 : f32
    %cst_15 = arith.constant 6.000000e+00 : f32
    %40 = vector.broadcast %cst_14 : f32 to vector<32x16xf32>
    %41 = arith.maximumf %40, %39 : vector<32x16xf32>
    %42 = vector.broadcast %cst_15 : f32 to vector<32x16xf32>
    %43 = arith.minimumf %42, %41 : vector<32x16xf32>
    %c0_16 = arith.constant 0 : index
    %c0_17 = arith.constant 0 : index
    %44 = vector.load %arg7[%c0_16, %c0_17] : memref<8x32xf32, #tpu.memory_space<vmem>>, vector<8x32xf32>
    %cst_18 = arith.constant dense<0.000000e+00> : vector<8x16xf32>
    %45 = tpu.matmul %44, %43, %cst_18 {dimension_numbers = #tpu.dot_dimension_numbers<[1], [0], [0], [1], [0, 0, 1, 1], [], []>} : vector<8x32xf32>, vector<32x16xf32>, vector<8x16xf32> -> vector<8x16xf32>
    %c0_19 = arith.constant 0 : index
    %c0_20 = arith.constant 0 : index
    %46 = vector.load %arg8[%c0_19, %c0_20] : memref<8x1xf32, #tpu.memory_space<vmem>>, vector<8x1xf32>
    %47 = vector.broadcast %46 : vector<8x1xf32> to vector<8x16xf32>
    %48 = arith.addf %45, %47 : vector<8x16xf32>
    %49 = vector.extract_strided_slice %2 {offsets = [0, 1], sizes = [8, 16], strides = [1, 1]} : vector<8x18xf32> to vector<8x16xf32>
    %50 = arith.addf %48, %49 : vector<8x16xf32>
    %c0_21 = arith.constant 0 : index
    %c0_22 = arith.constant 0 : index
    %c0_23 = arith.constant 0 : index
    %51 = vector.load %arg9[%c0_21, %c0_22, %c0_23] : memref<1x8x16xf32, #tpu.memory_space<vmem>>, vector<1x8x16xf32>
    %52 = vector.shape_cast %51 : vector<1x8x16xf32> to vector<8x16xf32>
    %53 = vector.shape_cast %50 : vector<8x16xf32> to vector<1x8x16xf32>
    tpu.vector_store %arg9[%c0_21, %c0_22, %c0_23], %53 {strides = array<i32>} : memref<1x8x16xf32, #tpu.memory_space<vmem>>, vector<1x8x16xf32>,
    return
  }
  func.func @transform_0(%arg0: i32, %arg1: i32) -> (i32, i32, i32) {
    %c0_i32 = arith.constant 0 : i32
    %c0_i32_0 = arith.constant 0 : i32
    %c0_i32_1 = arith.constant 0 : i32
    return %arg0, %c0_i32, %c0_i32_0 : i32, i32, i32
  }
  func.func @transform_1(%arg0: i32, %arg1: i32) -> (i32, i32) {
    %c0_i32 = arith.constant 0 : i32
    %c0_i32_0 = arith.constant 0 : i32
    %c0_i32_1 = arith.constant 0 : i32
    return %c0_i32, %c0_i32_0 : i32, i32
  }
  func.func @transform_2(%arg0: i32, %arg1: i32) -> (i32, i32) {
    %c0_i32 = arith.constant 0 : i32
    %c0_i32_0 = arith.constant 0 : i32
    %c0_i32_1 = arith.constant 0 : i32
    return %c0_i32, %c0_i32_0 : i32, i32
  }
  func.func @transform_3(%arg0: i32, %arg1: i32) -> (i32, i32) {
    %c0_i32 = arith.constant 0 : i32
    %c0_i32_0 = arith.constant 0 : i32
    %c0_i32_1 = arith.constant 0 : i32
    return %c0_i32, %c0_i32_0 : i32, i32
  }
  func.func @transform_4(%arg0: i32, %arg1: i32) -> (i32, i32) {
    %c0_i32 = arith.constant 0 : i32
    %c0_i32_0 = arith.constant 0 : i32
    %c0_i32_1 = arith.constant 0 : i32
    return %c0_i32, %c0_i32_0 : i32, i32
  }
  func.func @transform_5(%arg0: i32, %arg1: i32) -> (i32, i32) {
    %c0_i32 = arith.constant 0 : i32
    %c0_i32_0 = arith.constant 0 : i32
    %c0_i32_1 = arith.constant 0 : i32
    return %c0_i32, %c0_i32_0 : i32, i32
  }
  func.func @transform_6(%arg0: i32, %arg1: i32) -> (i32, i32) {
    %c0_i32 = arith.constant 0 : i32
    %c0_i32_0 = arith.constant 0 : i32
    %c0_i32_1 = arith.constant 0 : i32
    return %c0_i32, %c0_i32_0 : i32, i32
  }
  func.func @transform_7(%arg0: i32, %arg1: i32) -> (i32, i32, i32) {
    %c0_i32 = arith.constant 0 : i32
    %c0_i32_0 = arith.constant 0 : i32
    return %arg0, %c0_i32, %arg1 : i32, i32, i32
  }
}

</mosaic_0001>

<bundles_post_ra>
// kernel: inverted_residual_forward.1
= control target key start
LH: loop header
LB: loop body
LE: loop exit
PB: predicated region body
PF: predicated region fallthrough
CT: control target
= control target key end

     0   :  { %12 = vsyncpa [#allocation3], 0  ;;  %s1192_s0 = inlined_call_operand.vmem [shape: f32[2,8,18], index: 0, kind: input, shape index: {}]   ;;  %s1193_s1 = inlined_call_operand.vmem [shape: f32[32,8], index: 1, kind: input, shape index: {}]   ;;  %s1194_s2 = inlined_call_operand.vmem [shape: f32[32,1], index: 2, kind: input, shape index: {}]   ;;  %s1195_s3 = inlined_call_operand.vmem [shape: f32[32,3], index: 3, kind: input, shape index: {}]   ;;  %s1196_s4 = inlined_call_operand.vmem [shape: f32[32,1], index: 4, kind: input, shape index: {}]   ;;  %s1197_s5 = inlined_call_operand.vmem [shape: f32[8,32], index: 5, kind: input, shape index: {}]   ;;  %s1198_s6 = inlined_call_operand.vmem [shape: f32[8,1], index: 6, kind: input, shape index: {}]   ;;  %s1199_s7 = inlined_call_operand.hbm [shape: f32[2,8,16], index: 7, kind: output, shape index: {}]  }
   0x1   :  { %14 = vsyncpa [#allocation3 + $0x1], 0  ;;  %s1003_s24 = smov 0   ;;  %s1005_s25 = smov 0  }
   0x2   :  { %s1007_s26 = smov 0   ;;  %s1009_s27 = smov 0  }
   0x3   :  { %s1011_s28 = smov 0   ;;  %s1013_s29 = smov 0  }
   0x4 LB: > { %s750_s30 = sadd.s32 4294967295, %s952_s29   ;;  %s751_s8 = sadd.s32 4294967294, %s952_s29   ;;  %s952_s29 = sphi %s1013_s29, %s20_s29   ;;  %s948_s28 = sphi %s1011_s28, %s1208_s28   ;;  %s944_s27 = sphi %s1009_s27, %s1207_s27   ;;  %s940_s26 = sphi %s1007_s26, %s1206_s26   ;;  %s936_s25 = sphi %s1005_s25, %s1205_s25   ;;  %s932_s24 = sphi %s1003_s24, %s1204_s24  }
   0x5   : > { %s32_s9 = sadd.s32 1, %s948_s28  ;;  %s193_s10 = sadd.s32 1, %s940_s26 }
   0x6   : > { %p34_p0 = scmp.ge.s32.totalorder %s32_s9, 2  ;;  %p203_p1 = scmp.ne.s32.totalorder %s940_s26, %s936_s25 }
   0x7   : > { %p204_p2 = scmp.eq.s32.totalorder %s750_s30, 1  ;;  %p209_p3 = scmp.ne.s32.totalorder %s936_s25, %s932_s24 }
   0x8   : > { %s1210_s9 = smov (%p34_p0, %s32_s9), 0  ;;  %p210_p5 = scmp.eq.s32.totalorder %s751_s8, 1 }
   0x9   : > { %p1043_p4 = por %p204_p2, %p203_p1  ;;  %s188_s12 = ssub.s32 %s948_s28, %s1210_s9 }
   0xa   : > { %p754_p6 = scmp.ge.s32.totalorder %s952_s29, 1  ;;  %p191_p7 = scmp.eq.s32.totalorder %s188_s12, 0 }
   0xb   : > { %p1050_p8 = por %p210_p5, %p209_p3  ;;  %p253_p9 = scmp.lt.s32.totalorder %s952_s29, 3 }
   0xc   : > { %s1056_s14 = scalar_select %p191_p7, %s940_s26, %s193_s10  }
   0xd   : > { %p254_p10 = pnand %p754_p6, %p253_p9 }
   0xe   : > { %p284_p11 = scmp.lt.s32.totalorder (!%p254_p10), %s944_s27, 1  ;;  %v293_v0 = vld [vmem:[%s1193_s1] sm:$0xff] (!%p254_p10)  ;;  %vm321_vm0 = vcmask (!%p254_p10), 64512   ;;  %v954_v1 = vmov (!%p254_p10), 0   ;;  %v299_v2 = vld [vmem:[%s1194_s2 + $0x10] sm:$0xff] (!%p254_p10)  ;;  %v300_v4 = vld [vmem:[%s1194_s2 + $0x18] sm:$0xff] (!%p254_p10)  ;;  %v428_v23 = vlaneseq (!%p254_p10) }
   0xf   : > { %257 = sbr.rel (%p254_p10) target bundleno = 621 (0x26d), region = 48  ;;  %778 = vmatprep.mubr.msk.f32.mxu0 (!%p254_p10), %vm321_vm0, %v293_v0  ;;  %865 = vset.pattern.permute.xlu1 (!%p254_p10), %v954_v1  ;;  %v297_v3 = vld [vmem:[%s1194_s2] sm:$0xff] (!%p254_p10)  ;;  %v298_v5 = vld [vmem:[%s1194_s2 + $0x8] sm:$0xff] (!%p254_p10)  ;;  %v295_v8 = vld [vmem:[%s1193_s1 + $0x10] sm:$0xff] (!%p254_p10)  ;;  %v955_v11 = vmov (!%p254_p10), 1   ;;  %v956_v13 = vmov (!%p254_p10), 2  }
  0x10   : > { %313 = vperm.xlu1 (!%p254_p10), %865, %v299_v2   ;;  %864 = vset.pattern.permute.xlu0 (!%p254_p10), %v954_v1  ;;  %v294_v7 = vld [vmem:[%s1193_s1 + $0x8] sm:$0xff] (!%p254_p10)  ;;  %v296_v10 = vld [vmem:[%s1193_s1 + $0x18] sm:$0xff] (!%p254_p10)  ;;  %v288_v12 = vld [vmem:[%s1195_s3] sm:$0xff] (!%p254_p10)  ;;  %v429_v25 = vand.u32 (!%p254_p10), 127, %v428_v23  ;;  %s957_s10 = smov (!%p254_p10), 127   ;;  %v958_v53 = vmov (!%p254_p10), 0.0|0.0  }
  0x11   : > { %303 = vperm.xlu0 (!%p254_p10), %864, %v297_v3   ;;  %v289_v9 = vld [vmem:[%s1195_s3 + $0x8] sm:$0xff] (!%p254_p10)  ;;  %v290_v14 = vld [vmem:[%s1195_s3 + $0x10] sm:$0xff] (!%p254_p10)  ;;  %v291_v15 = vld [vmem:[%s1195_s3 + $0x18] sm:$0xff] (!%p254_p10)  ;;  %795 = vmatprep.subr.bf16.mxu1 (!%p254_p10), %v958_v53  ;;  %s959_s12 = smov (!%p254_p10), 126   ;;  %vm960_vm4 = vmmov (!%p254_p10), 0   ;;  %v961_v0 = vmov (!%p254_p10), 0.0  }
  0x12   : > { %v544_v16 = vld [vmem:[%s1196_s4 + $0x8] sm:$0xff] (!%p254_p10)  ;;  %v546_v17 = vld [vmem:[%s1196_s4 + $0x18] sm:$0xff] (!%p254_p10)  ;;  %v543_v18 = vld [vmem:[%s1196_s4] sm:$0xff] (!%p254_p10)  ;;  %vm432_vm1 = vcmp.ge.s32.totalorder (!%p254_p10), %v429_v25, 1  ;;  %vm433_vm2 = vcmp.le.s32.totalorder (!%p254_p10), %v429_v25, 16  ;;  %792 = vmatprep.mubr.msk.f32.mxu1 (!%p254_p10), %vm960_vm4, %v961_v0  ;;  %vm586_vm5 = vcmask (!%p254_p10), 261120  }
  0x13   : > { %v545_v19 = vld [vmem:[%s1196_s4 + $0x10] sm:$0xff] (!%p254_p10)  ;;  %vm1119_vm3 = vmand (!%p254_p10), %vm432_vm1, %vm433_vm2  ;;  %s281_s20 = sand.u32 (!%p254_p10), 1, %s936_s25   ;;  %vm665_vm6 = vcmask (!%p254_p10), 130048  }
  0x14   : > { %318 = vperm.xlu1 (!%p254_p10), %865, %v300_v4   ;;  %s755_s21 = sshll.u32 (!%p254_p10), %s281_s20, 3 }
  0x15   : > { %308 = vperm.xlu0 (!%p254_p10), %864, %v298_v5   ;;  %s283_s22 = scalar_lea.vmem (!%p254_p10), [#allocation2], %s755_s21 }
  0x16   : > { %s285_s19 = scalar_select %p284_p11, %s944_s27, 1 }
  0x17   : > { %s682_s23 = sshll.u32 %s283_s22, 4  ;;  %s1147_s23 = int_to_ptr.vmem [resolvable:$true] %s682_s23 }
  0x18   : > { %s756_s30 = sshll.u32 %s285_s19, 3  ;;  %867 = vset.pattern.permute.xlu1 %v955_v11  ;;  %s763_s19 = sshll.u32 %s944_s27, 7 }
  0x19   : > { %s287_s16 = scalar_lea.vmem %s1192_s0, %s756_s30  ;;  %468 = vperm.xlu1 %867, %v289_v9   ;;  %866 = vset.pattern.permute.xlu0 %v955_v11  ;;  %s874_s15 = scalar_lea.vmem %s1147_s23, 128 }
  0x1a   : > { %v1079_v6 = vld [vmem:[%s287_s16] sm:$0xff]  ;;  %464 = vperm.xlu0 %866, %v288_v12   ;;  %p875_p12 = scmp.ne.s32.totalorder %s1147_s23, %s874_s15  ;;  %s962_s27 = smov [#allocation2]  }
  0x1b   : > { %776 = vmatprep.subr.mxu0 %v1079_v6  ;;  %s878_s16 = sshll.u32 %s962_s27, 4  ;;  %s879_s16 = int_to_ptr.vmem [resolvable:$false] %s878_s16 }
  0x1c   : > { %777 = vmatpush3.msra.mxu0 %v1079_v6  ;;  %p876_p13 = pnand %p875_p12, %p1043_p4  ;;  %s880_s17 = scalar_lea.vmem %s879_s16, 256 }
  0x1d   : > { %779 = vmatmul.mubr.msk.f32.vlgmr.msra.gmra.mrb[0].mxu0 %vm321_vm0, %v294_v7  ;;  %868 = vset.pattern.permute.xlu1 %v956_v13  ;;  %p881_p1 = scmp.lt.s32.totalorder %s1147_s23, %s879_s16  ;;  %p882_p2 = scmp.lt.s32.totalorder %s880_s17, %s874_s15 }
  0x1e   : > { %781 = vmatprep.mubr.msk.f32.mxu0 %vm321_vm0, %v295_v8  ;;  %504 = vperm.xlu1 %868, %v288_v12   ;;  %p877_p0 = pneg %p876_p13 }
  0x1f   : > { %869 = vset.pattern.permute.xlu0 %v956_v13  ;;  %p883_p3 = por %p882_p2, %p881_p1 }
  0x20   : > { %508 = vperm.xlu0 %869, %v289_v9  }
  0x21   : > { %782 = vmatmul.mubr.msk.f32.gmra.mrb[2].mxu0 %vm321_vm0, %v296_v10  ;;  %p884_p5 = pnand %p883_p3, %p877_p0 }
  0x22   : > { %870 = vset.pattern.permute.xlu1 %v955_v11 }
  0x23   : > { %472 = vperm.xlu1 %870, %v290_v14  }
  0x24   : > { %512 = vperm.xlu0 %869, %v290_v14  }
  0x27   : > { %476 = vperm.xlu1 %870, %v291_v15  }
  0x28   : > { %872 = vset.pattern.permute.xlu0 %v954_v1 }
  0x29   : > { %441 = vperm.xlu0 %872, %v288_v12  }
  0x2b   : > { %871 = vset.pattern.permute.xlu1 %v956_v13 }
  0x2c   : > { %516 = vperm.xlu1 %871, %v291_v15  }
  0x2d   : > { %456 = vperm.xlu0 %872, %v291_v15  }
  0x30   : > { %873 = vset.pattern.permute.xlu1 %v954_v1  ;;  %v580_v1 = vld [vmem:[%s1198_s6] sm:$0xff] }
  0x31   : > { %554 = vperm.xlu0 %872, %v544_v16   ;;  %446 = vperm.xlu1 %873, %v289_v9  }
  0x35   : > { %564 = vperm.xlu0 %872, %v546_v17   ;;  %451 = vperm.xlu1 %873, %v290_v14  }
  0x39   : > { %549 = vperm.xlu1 %873, %v543_v18  }
  0x3d   : > { %559 = vperm.xlu1 %873, %v545_v19  }
  0x8f   : > { %v314_v20 = vpop.permute.xlu1 %313 }
  0x90   : > { %v304_v22 = vpop.permute.xlu0 %303 }
  0x93   : > { %v319_v21 = vpop.permute.xlu1 %318 }
  0x94   : > { %v309_v26 = vpop.permute.xlu0 %308 }
  0x98   : > { %v469_v24 = vpop.permute.xlu1 %468 }
  0x99   : > { %v465_v36 = vpop.permute.xlu0 %464 }
  0x9d   : > { %v505_v28 = vpop.permute.xlu1 %504 }
  0x9f   : > { %v509_v51 = vpop.permute.xlu0 %508 }
  0xa2   : > { %v473_v42 = vpop.permute.xlu1 %472 }
  0xa3   : > { %v513_v61 = vpop.permute.xlu0 %512 }
  0xa6   : > { %v477_v54 = vpop.permute.xlu1 %476 }
  0xa8   : > { %v442_v2 = vpop.permute.xlu0 %441 }
  0xab   : > { %v517_v60 = vpop.permute.xlu1 %516 }
  0xac   : > { %v457_v4 = vpop.permute.xlu0 %456 }
  0xb0   : > { %v447_v3 = vpop.permute.xlu1 %446  ;;  %v555_v7 = vpop.permute.xlu0 %554 }
  0xb4   : > { %v452_v5 = vpop.permute.xlu1 %451  ;;  %v565_v9 = vpop.permute.xlu0 %564 }
  0xb8   : > { %v550_v8 = vpop.permute.xlu1 %549 }
  0xbc   : > { %v560_v10 = vpop.permute.xlu1 %559 }
  0xf0   : > { %v780_v27 = vpop.f32.mrb[0].mxu0 }
  0xf1   : > { %v406_v29 = vadd.f32 %v780_v27, %v309_v26  ;;  %v400_v30 = vpop.f32.mrb[1].mxu0 }
  0xf2   : > { %v401_v31 = vadd.f32 %v400_v30, %v304_v22 }
  0xf3   : > { %v420_v32 = vmax.f32 %v406_v29, 0.0 }
  0xf4   : > { %v419_v33 = vmax.f32 %v401_v31, 0.0  ;;  %v783_v34 = vpop.f32.mrb[2].mxu0 }
  0xf5   : > { %v424_v37 = vmin.f32 %v420_v32, 6.0  ;;  %v416_v38 = vadd.f32 %v783_v34, %v319_v21  ;;  %v410_v39 = vpop.f32.mrb[3].mxu0 }
  0xf6   : > { %v423_v40 = vmin.f32 %v419_v33, 6.0  ;;  %v411_v41 = vadd.f32 %v410_v39, %v314_v20 }
  0xf7   : > { %v422_v43 = vmax.f32 %v416_v38, 0.0  ;;  %v436_v44 = vsel %vm1119_vm3, %v424_v37, 0.0 }
  0xf8   : > { %v421_v45 = vmax.f32 %v411_v41, 0.0  ;;  %v435_v46 = vsel %vm1119_vm3, %v423_v40, 0.0  ;;  %v480_v47 = vmul.f32 %v469_v24, %v436_v44  ;;  %v520_v52 = vmul.f32 %v509_v51, %v436_v44 }
  0xf9   : > { %v426_v48 = vmin.f32 %v422_v43, 6.0  ;;  %v479_v49 = vmul.f32 %v465_v36, %v435_v46  ;;  %v519_v56 = vmul.f32 %v505_v28, %v435_v46  ;;  %v460_v12 = vmul.f32 %v447_v3, %v436_v44  ;;  %v579_v44 = vld [vmem:[%s1197_s5] sm:$0xff] }
  0xfa   : > { %v425_v50 = vmin.f32 %v421_v45, 6.0  ;;  %489 = vrot.lane.b32.xlu0 %v480_v47, %s957_s10  ;;  %v459_v14 = vmul.f32 %v442_v2, %v435_v46 }
  0xfb   : > { %487 = vrot.lane.b32.xlu1 %v479_v49, %s957_s10  ;;  %v438_v55 = vsel %vm1119_vm3, %v426_v48, 0.0 }
  0xfc   : > { %v437_v57 = vsel %vm1119_vm3, %v425_v50, 0.0  ;;  %v482_v58 = vmul.f32 %v477_v54, %v438_v55  ;;  %v522_v62 = vmul.f32 %v517_v60, %v438_v55  ;;  %v462_v23 = vmul.f32 %v457_v4, %v438_v55 }
  0xfd   : > { %v481_v59 = vmul.f32 %v473_v42, %v437_v57  ;;  %v521_v63 = vmul.f32 %v513_v61, %v437_v57  ;;  %v461_v26 = vmul.f32 %v452_v5, %v437_v57 }
  0xfe   : > { %529 = vrot.lane.b32.xlu0 %v520_v52, %s959_s12 }
  0xff   : > { %527 = vrot.lane.b32.xlu1 %v519_v56, %s959_s12 }
 0x102   : > { %493 = vrot.lane.b32.xlu0 %v482_v58, %s957_s10 }
 0x103   : > { %491 = vrot.lane.b32.xlu1 %v481_v59, %s957_s10 }
 0x106   : > { %533 = vrot.lane.b32.xlu0 %v522_v62, %s959_s12 }
 0x107   : > { %531 = vrot.lane.b32.xlu1 %v521_v63, %s959_s12  ;;  %s668_s12 = scalar_lea.sflag [#allocation3], %s281_s20 }
 0x10a   : > { %661 = vrot.lane.b32.xlu0 %v1079_v6, %s957_s10  ;;  %s1145_s10 = scalar_lea.hbm %s1199_s7, %s763_s19 }
 0x10b   : > { %583 = vperm.xlu1 %873, %v580_v1  }
 0x16c   : > { %v490_v11 = vpop.permute.xlu0 %489 }
 0x16d   : > { %v488_v13 = vpop.permute.xlu1 %487  ;;  %v500_v15 = vadd.f32 %v490_v11, %v460_v12 }
 0x16e   : > { %v499_v16 = vadd.f32 %v488_v13, %v459_v14 }
 0x170   : > { %v530_v17 = vpop.permute.xlu0 %529 }
 0x171   : > { %v540_v18 = vadd.f32 %v530_v17, %v500_v15  ;;  %v528_v19 = vpop.permute.xlu1 %527 }
 0x172   : > { %v539_v20 = vadd.f32 %v528_v19, %v499_v16 }
 0x173   : > { %v568_v6 = vadd.f32 %v555_v7, %v540_v18 }
 0x174   : > { %v567_v21 = vadd.f32 %v550_v8, %v539_v20  ;;  %v494_v22 = vpop.permute.xlu0 %493 }
 0x175   : > { %v572_v24 = vmax.f32 %v568_v6, 0.0  ;;  %v492_v25 = vpop.permute.xlu1 %491  ;;  %v502_v28 = vadd.f32 %v494_v22, %v462_v23 }
 0x176   : > { %v571_v27 = vmax.f32 %v567_v21, 0.0  ;;  %v501_v30 = vadd.f32 %v492_v25, %v461_v26 }
 0x177   : > { %v576_v29 = vmin.f32 %v572_v24, 6.0 }
 0x178   : > { %v534_v31 = vpop.permute.xlu0 %533  ;;  %v575_v32 = vmin.f32 %v571_v27, 6.0 }
 0x179   : > { %v542_v33 = vadd.f32 %v534_v31, %v502_v28  ;;  %v532_v34 = vpop.permute.xlu1 %531 }
 0x17a   : > { %v541_v35 = vadd.f32 %v532_v34, %v501_v30  ;;  %v796_v36 = vpack.c.bf16 %v576_v29, %v575_v32 }
 0x17b   : > { %v570_v37 = vadd.f32 %v565_v9, %v542_v33 }
 0x17c   : > { %v569_v38 = vadd.f32 %v560_v10, %v541_v35  ;;  %797 = vmatpush3.bf16.msra.mxu1 %v796_v36  ;;  %v662_v47 = vpop.permute.xlu0 %661 }
 0x17d   : > { %v574_v39 = vmax.f32 %v570_v37, 0.0  ;;  %798 = vmatprep.subr.bf16.mxu1 %v958_v53 }
 0x17e   : > { %v573_v40 = vmax.f32 %v569_v38, 0.0 }
 0x17f   : > { %v578_v41 = vmin.f32 %v574_v39, 6.0 }
 0x180   : > { %v577_v42 = vmin.f32 %v573_v40, 6.0 }
 0x182   : > { %v799_v43 = vpack.c.bf16 %v578_v41, %v577_v42 }
 0x184   : > { %800 = vmatpush3.bf16.msra.mxu1 %v799_v43 }
 0x187   : > { %793 = vmatmul.mubr.msk.f32.vlgmr.msra.gmra.mrb[0].mxu1 %vm586_vm5, %v579_v44 }
 0x18a   : > { %v584_v45 = vpop.permute.xlu1 %583 }
 0x25a   : > { %v656_v46 = vpop.f32.mrb[0].mxu1 }
 0x25b   : > { %v657_v48 = vadd.f32 %v656_v46, %v584_v45  ;;  %v794_v49 = vpop.f32.mrb[1].mxu1 }
 0x25d   : > { %v664_v50 = vadd.f32 %v662_v47, %v657_v48 }
 0x25f   : > { %666 = vst.msk [vmem:[%s283_s22] sm:$0xff] %vm665_vm6, %v664_v50 }
 0x260   : > { %887 = shalt.err (!%p884_p5)
}
 0x261   : > { %s888_s18 = scalar_lea.hbm %s1145_s10, 128  ;;  %s892_s19 = scalar_lea.hbm %s1199_s7, 256 }
 0x262   : > { %p889_p6 = scmp.ne.s32.totalorder %s1145_s10, %s888_s18  ;;  %p893_p10 = scmp.lt.u32.totalorder %s1145_s10, %s1199_s7 }
 0x263   : > { %p894_p11 = scmp.lt.u32.totalorder %s892_s19, %s888_s18  ;;  %p896_p13 = scmp.lt.u32.totalorder %s888_s18, %s1145_s10 }
 0x264   : > { %p890_p7 = pnand %p889_p6, %p1043_p4 }
 0x265   : > { %p895_p12 = por %p894_p11, %p893_p10 }
 0x266   : > { %p891_p9 = pneg %p890_p7 }
 0x267   : > { %p897_p0 = por %p896_p13, %p895_p12 }
 0x269   : > { %p898_p1 = pnand %p897_p0, %p891_p9 }
 0x26b   : > { %901 = shalt.err (!%p898_p1)
}
 0x26c   : > { %801 = dma.vmem_to_hbm [thread:$0]  (%p1043_p4), %s1147_s23, 128, %s1145_s10, %s668_s12  }
 0x26d PF: > { %p807_p2 = scmp.ge.s32.totalorder %s952_s29, 2  ;;  %s694_s8 = sand.u32 1, %s932_s24  }
 0x26e   : > { %s695_s15 = scalar_lea.sflag [#allocation3], %s694_s8 }
 0x26f   : > { %p804_p3 = pnand %p807_p2, %p1050_p8 }
 0x271   : > { %927 = dma.done.wait (!%p804_p3), %s695_s15, 128  }
 0x272   : > { %929 = vsyncadd (!%p804_p3), %s695_s15, 4294967168  ;;  %s20_s29 = sadd.s32 1, %s952_s29   ;;  %s1204_s24 = smov %s936_s25 }
 0x273   : > { %p17_p5 = scmp.ge.s32.totalorder %s20_s29, 4   ;;  %s1205_s25 = smov %s940_s26 }
 0x274   : > { %s1206_s26 = smov %s1056_s14  ;;  %s1207_s27 = smov %s948_s28 }
 0x275   : > { %s1208_s28 = smov %s1210_s9  ;;  %19 = sbr.rel (!%p17_p5) target bundleno = 4 (0x4), region = 83 }
 0x27c   :  { %700 = vsyncpa [#allocation3], 1 }
 0x27d   :  { %702 = vsyncpa [#allocation3 + $0x1], 1 }

</bundles_post_ra>
